<compile_context>
chip_gen: v5e
topology: v5e:2x2
jax: 0.10.0
libtpu: 0.0.40
codegen_flags: <defaults>
</compile_context>

<pallas_src>
import numpy as np
import jax
import jax.numpy as jnp
from jax.experimental import pallas as pl
from jax.experimental.pallas import tpu as pltpu


# ----------------------------------------------------------------------------
# Pallas kernel: Bt batch images per grid step.
#   x1_ref, x2_ref : (Bt, C, P)   flattened NCHW features
#   w_i1/w_i2      : (C, C)       conv_init weight halves, TRANSPOSED and pre-scaled by 1/P
#   b_init         : (1, C)
#   w_dc           : (C, Cr)      conv_dc weight, transposed;  b_dc: (1, Cr)
#   w_gate         : (Cr, C)      (W_ic[:C] - W_ic[C:]).T  (folded branch difference)
#   b_gate         : (1, C)       b_ic[:C] - b_ic[C:]
#   out_ref        : (Bt, C, P)
# ----------------------------------------------------------------------------
def asyca_kernel(x1_ref, x2_ref, w_i1_ref, w_i2_ref, b_init_ref,
                 w_dc_ref, b_dc_ref, w_gate_ref, b_gate_ref, out_ref):
    x1 = x1_ref[...]                                   # (Bt, C, P)
    x2 = x2_ref[...]                                   # (Bt, C, P)

    # Per-channel global sums over the P lanes (the 1/P average factor is folded into
    # w_i1/w_i2 in the wrapper).  Upcast guards accuracy if inputs are ever bf16.
    m1 = jnp.sum(x1.astype(jnp.float32), axis=2)       # (Bt, C)
    m2 = jnp.sum(x2.astype(jnp.float32), axis=2)       # (Bt, C)

    # conv_init on the pooled vectors (avg-pool commutes with the 1x1 conv); the channel
    # concat is folded into the two pre-split weight halves.
    p = (jnp.dot(m1, w_i1_ref[...], preferred_element_type=jnp.float32)
         + jnp.dot(m2, w_i2_ref[...], preferred_element_type=jnp.float32)
         + b_init_ref[...])                            # (Bt, C)

    # conv_dc + ReLU
    d = jnp.maximum(
        jnp.dot(p, w_dc_ref[...], preferred_element_type=jnp.float32) + b_dc_ref[...],
        0.0)                                           # (Bt, Cr)

    # softmax over the two branches per channel == sigmoid(e0 - e1) (exact); the branch
    # difference of conv_ic is pre-folded into w_gate / b_gate in the wrapper.
    a0 = jax.nn.sigmoid(
        jnp.dot(d, w_gate_ref[...], preferred_element_type=jnp.float32)
        + b_gate_ref[...])                             # (Bt, C)

    # V = a0 * x1 + (1 - a0) * x2, per-(image, channel) gate broadcast over the P lanes.
    g = a0[:, :, None].astype(x1.dtype)                # (Bt, C, 1)
    out_ref[...] = (g * x1 + (1.0 - g) * x2).astype(out_ref.dtype)


# ----------------------------------------------------------------------------
# Batch-block size heuristic: ~1 MiB per big operand block, a divisor of B, and at least
# two grid steps when B >= 2 (so both v7x TensorCores get work on this mem-bound kernel).
# ----------------------------------------------------------------------------
def _choose_block_batch(B, C, P, itemsize, target_bytes=1 << 20):
    per_img = C * P * itemsize
    bt = max(1, min(B, target_bytes // per_img))
    if B >= 2:
        bt = min(bt, max(1, B // 2))
    while B % bt:            # keep edge blocks full (no ragged / masked tail block)
        bt -= 1
    return int(bt)


# ----------------------------------------------------------------------------
# Wrapper: layout prep + weight folding in plain JAX, everything else in Pallas.
# Weight shapes follow PyTorch's Conv2d (1x1 kernels squeezed):
#   W_init: (C, 2C), W_dc: (Cr, C), W_ic: (2C, Cr); biases 1-D.
# ----------------------------------------------------------------------------
def asyca_forward(x1, x2, W_init, b_init, W_dc, b_dc, W_ic, b_ic):
    B, C, Hh, Ww = x1.shape
    P = Hh * Ww
    Cr = W_dc.shape[0]

    x1f = x1.reshape(B, C, P)                          # free reshape of NCHW
    x2f = x2.reshape(B, C, P)

    inv_p = jnp.float32(1.0 / P)
    # conv_init split into the x1/x2 halves, transposed for row-batched matmuls, and
    # pre-scaled by 1/P (folds the average-pool normalization).
    w_i1t = (W_init[:, :C] * inv_p).T                  # (C, C)
    w_i2t = (W_init[:, C:] * inv_p).T                  # (C, C)
    b_init_r = b_init.reshape(1, C)
    w_dct = W_dc.T                                     # (C, Cr)
    b_dc_r = b_dc.reshape(1, Cr)
    # Folded gate = branch-0 minus branch-1 of conv_ic (softmax over 2 == sigmoid(diff)).
    w_gatet = (W_ic[:C] - W_ic[C:]).T                  # (Cr, C)
    b_gate_r = (b_ic[:C] - b_ic[C:]).reshape(1, C)

    Bt = _choose_block_batch(B, C, P, np.dtype(x1.dtype).itemsize)
    grid = (B // Bt,)

    full = lambda b: (0, 0)
    big = lambda b: (b, 0, 0)

    out_flat = pl.pallas_call(
        asyca_kernel,
        out_shape=jax.ShapeDtypeStruct((B, C, P), x1.dtype),
        grid_spec=pltpu.PrefetchScalarGridSpec(
            num_scalar_prefetch=0,
            grid=grid,
            in_specs=[
                pl.BlockSpec((Bt, C, P), big),          # x1
                pl.BlockSpec((Bt, C, P), big),          # x2
                pl.BlockSpec((C, C), full),             # w_i1t
                pl.BlockSpec((C, C), full),             # w_i2t
                pl.BlockSpec((1, C), full),             # b_init
                pl.BlockSpec((C, Cr), full),            # w_dct
                pl.BlockSpec((1, Cr), full),            # b_dc
                pl.BlockSpec((Cr, C), full),            # w_gatet
                pl.BlockSpec((1, C), full),             # b_gate
            ],
            out_specs=pl.BlockSpec((Bt, C, P), big),
        ),
        compiler_params=pltpu.CompilerParams(
            dimension_semantics=("parallel",)),
    )(x1f, x2f, w_i1t, w_i2t, b_init_r, w_dct, b_dc_r, w_gatet, b_gate_r)

    return out_flat.reshape(B, C, Hh, Ww)


# ----------------------------------------------------------------------------
# Pure-JAX reference replicating the PyTorch forward op-for-op (for verification).
# ----------------------------------------------------------------------------
def reference_forward(x1, x2, W_init, b_init, W_dc, b_dc, W_ic, b_ic):
    B, C, Hh, Ww = x1.shape
    feat = jnp.concatenate([x1, x2], axis=1)                                  # (B, 2C, H, W)
    feat_init = jnp.einsum('oc,bchw->bohw', W_init, feat) + b_init[None, :, None, None]
    fea_avg = jnp.mean(feat_init, axis=(2, 3), keepdims=True)                 # (B, C, 1, 1)
    t = jnp.einsum('oc,bcij->boij', W_dc, fea_avg) + b_dc[None, :, None, None]
    t = jnp.maximum(t, 0.0)
    t = jnp.einsum('oc,bcij->boij', W_ic, t) + b_ic[None, :, None, None]      # (B, 2C, 1, 1)
    a_b = jax.nn.softmax(t.reshape(B, 2, C, -1), axis=1)
    a0 = a_b[:, 0].reshape(B, C, 1, 1)
    a1 = a_b[:, 1].reshape(B, C, 1, 1)
    return a0 * x1 + a1 * x2


def _make_params(key, C, ratio):
    Cr = C // ratio
    ks = jax.random.split(key, 6)
    # PyTorch-style Conv2d init: uniform(-1/sqrt(fan_in), 1/sqrt(fan_in)).
    k_init = 1.0 / np.sqrt(2 * C)
    W_init = jax.random.uniform(ks[0], (C, 2 * C), jnp.float32, -k_init, k_init)
    b_init = jax.random.uniform(ks[1], (C,), jnp.float32, -k_init, k_init)
    k_dc = 1.0 / np.sqrt(C)
    W_dc = jax.random.uniform(ks[2], (Cr, C), jnp.float32, -k_dc, k_dc)
    b_dc = jax.random.uniform(ks[3], (Cr,), jnp.float32, -k_dc, k_dc)
    k_ic = 1.0 / np.sqrt(Cr)
    W_ic = jax.random.uniform(ks[4], (2 * C, Cr), jnp.float32, -k_ic, k_ic)
    b_ic = jax.random.uniform(ks[5], (2 * C,), jnp.float32, -k_ic, k_ic)
    return W_init, b_init, W_dc, b_dc, W_ic, b_ic


if __name__ == "__main__":
    key = jax.random.PRNGKey(0)

    # Config 1: small shapes consistent with the module (num_features=64, ratio=4, 16x16).
    # Config 2: larger batch to exercise the batch-blocked (Bt > 1) MLP path.
    for (B, C, Hh, Ww, ratio) in [(2, 64, 16, 16, 4), (8, 64, 16, 16, 4)]:
        key, k1, k2, kp = jax.random.split(key, 4)
        x1 = jax.random.normal(k1, (B, C, Hh, Ww), jnp.float32)
        x2 = jax.random.normal(k2, (B, C, Hh, Ww), jnp.float32)
        params = _make_params(kp, C, ratio)

        out = jax.block_until_ready(asyca_forward(x1, x2, *params))
        assert out.shape == (B, C, Hh, Ww), out.shape

        ref = jax.block_until_ready(reference_forward(x1, x2, *params))
        np.testing.assert_allclose(np.asarray(out), np.asarray(ref), rtol=1e-4, atol=1e-4)

    print("KERNEL_OK")
</pallas_src>

<mosaic_0001>
module attributes {stable_mosaic.version = 11 : i64} {
  func.func @asyca_kernel(%arg0: i32, %arg1: memref<1x64x256xf32, #tpu.memory_space<vmem>>, %arg2: memref<1x64x256xf32, #tpu.memory_space<vmem>>, %arg3: memref<64x64xf32, #tpu.memory_space<vmem>>, %arg4: memref<64x64xf32, #tpu.memory_space<vmem>>, %arg5: memref<1x64xf32, #tpu.memory_space<vmem>>, %arg6: memref<64x16xf32, #tpu.memory_space<vmem>>, %arg7: memref<1x16xf32, #tpu.memory_space<vmem>>, %arg8: memref<16x64xf32, #tpu.memory_space<vmem>>, %arg9: memref<1x64xf32, #tpu.memory_space<vmem>>, %arg10: memref<1x64x256xf32, #tpu.memory_space<vmem>>) attributes {dimension_semantics = [#tpu.dimension_semantics<parallel>], iteration_bounds = array<i64: 2>, scalar_prefetch = 0 : i64, scratch_operands = 0 : i64, tpu.core_type = #tpu.core_type<tc>, window_params = [{transform_indices = @transform_0, window_bounds = array<i64: 1, 64, 256>}, {transform_indices = @transform_1, window_bounds = array<i64: 1, 64, 256>}, {pipeline_mode = #tpu.pipeline_mode<synchronous>, transform_indices = @transform_2, window_bounds = array<i64: 64, 64>}, {pipeline_mode = #tpu.pipeline_mode<synchronous>, transform_indices = @transform_3, window_bounds = array<i64: 64, 64>}, {pipeline_mode = #tpu.pipeline_mode<synchronous>, transform_indices = @transform_4, window_bounds = array<i64: 1, 64>}, {pipeline_mode = #tpu.pipeline_mode<synchronous>, transform_indices = @transform_5, window_bounds = array<i64: 64, 16>}, {pipeline_mode = #tpu.pipeline_mode<synchronous>, transform_indices = @transform_6, window_bounds = array<i64: 1, 16>}, {pipeline_mode = #tpu.pipeline_mode<synchronous>, transform_indices = @transform_7, window_bounds = array<i64: 16, 64>}, {pipeline_mode = #tpu.pipeline_mode<synchronous>, transform_indices = @transform_8, window_bounds = array<i64: 1, 64>}, {transform_indices = @transform_9, window_bounds = array<i64: 1, 64, 256>}]} {
    %c0 = arith.constant 0 : index
    %c0_0 = arith.constant 0 : index
    %c0_1 = arith.constant 0 : index
    %0 = vector.load %arg1[%c0, %c0_0, %c0_1] : memref<1x64x256xf32, #tpu.memory_space<vmem>>, vector<1x64x256xf32>
    %c0_2 = arith.constant 0 : index
    %c0_3 = arith.constant 0 : index
    %c0_4 = arith.constant 0 : index
    %1 = vector.load %arg2[%c0_2, %c0_3, %c0_4] : memref<1x64x256xf32, #tpu.memory_space<vmem>>, vector<1x64x256xf32>
    %cst = arith.constant dense<0.000000e+00> : vector<1x64xf32>
    %2 = vector.multi_reduction <add>, %0, %cst [2] : vector<1x64x256xf32> to vector<1x64xf32>
    %cst_5 = arith.constant dense<0.000000e+00> : vector<1x64xf32>
    %3 = vector.multi_reduction <add>, %1, %cst_5 [2] : vector<1x64x256xf32> to vector<1x64xf32>
    %c0_6 = arith.constant 0 : index
    %c0_7 = arith.constant 0 : index
    %4 = vector.load %arg3[%c0_6, %c0_7] : memref<64x64xf32, #tpu.memory_space<vmem>>, vector<64x64xf32>
    %cst_8 = arith.constant dense<0.000000e+00> : vector<1x64xf32>
    %5 = tpu.matmul %2, %4, %cst_8 {dimension_numbers = #tpu.dot_dimension_numbers<[1], [0], [0], [1], [0, 0, 1, 1], [], []>} : vector<1x64xf32>, vector<64x64xf32>, vector<1x64xf32> -> vector<1x64xf32>
    %c0_9 = arith.constant 0 : index
    %c0_10 = arith.constant 0 : index
    %6 = vector.load %arg4[%c0_9, %c0_10] : memref<64x64xf32, #tpu.memory_space<vmem>>, vector<64x64xf32>
    %cst_11 = arith.constant dense<0.000000e+00> : vector<1x64xf32>
    %7 = tpu.matmul %3, %6, %cst_11 {dimension_numbers = #tpu.dot_dimension_numbers<[1], [0], [0], [1], [0, 0, 1, 1], [], []>} : vector<1x64xf32>, vector<64x64xf32>, vector<1x64xf32> -> vector<1x64xf32>
    %8 = arith.addf %5, %7 : vector<1x64xf32>
    %c0_12 = arith.constant 0 : index
    %c0_13 = arith.constant 0 : index
    %9 = vector.load %arg5[%c0_12, %c0_13] : memref<1x64xf32, #tpu.memory_space<vmem>>, vector<1x64xf32>
    %10 = arith.addf %8, %9 : vector<1x64xf32>
    %c0_14 = arith.constant 0 : index
    %c0_15 = arith.constant 0 : index
    %11 = vector.load %arg6[%c0_14, %c0_15] : memref<64x16xf32, #tpu.memory_space<vmem>>, vector<64x16xf32>
    %cst_16 = arith.constant dense<0.000000e+00> : vector<1x16xf32>
    %12 = tpu.matmul %10, %11, %cst_16 {dimension_numbers = #tpu.dot_dimension_numbers<[1], [0], [0], [1], [0, 0, 1, 1], [], []>} : vector<1x64xf32>, vector<64x16xf32>, vector<1x16xf32> -> vector<1x16xf32>
    %c0_17 = arith.constant 0 : index
    %c0_18 = arith.constant 0 : index
    %13 = vector.load %arg7[%c0_17, %c0_18] : memref<1x16xf32, #tpu.memory_space<vmem>>, vector<1x16xf32>
    %14 = arith.addf %12, %13 : vector<1x16xf32>
    %cst_19 = arith.constant 0.000000e+00 : f32
    %15 = vector.broadcast %cst_19 : f32 to vector<1x16xf32>
    %16 = arith.maximumf %14, %15 : vector<1x16xf32>
    %c0_20 = arith.constant 0 : index
    %c0_21 = arith.constant 0 : index
    %17 = vector.load %arg8[%c0_20, %c0_21] : memref<16x64xf32, #tpu.memory_space<vmem>>, vector<16x64xf32>
    %cst_22 = arith.constant dense<0.000000e+00> : vector<1x64xf32>
    %18 = tpu.matmul %16, %17, %cst_22 {dimension_numbers = #tpu.dot_dimension_numbers<[1], [0], [0], [1], [0, 0, 1, 1], [], []>} : vector<1x16xf32>, vector<16x64xf32>, vector<1x64xf32> -> vector<1x64xf32>
    %c0_23 = arith.constant 0 : index
    %c0_24 = arith.constant 0 : index
    %19 = vector.load %arg9[%c0_23, %c0_24] : memref<1x64xf32, #tpu.memory_space<vmem>>, vector<1x64xf32>
    %20 = arith.addf %18, %19 : vector<1x64xf32>
    %21 = arith.negf %20 : vector<1x64xf32>
    %22 = math.exp %21 : vector<1x64xf32>
    %cst_25 = arith.constant 1.000000e+00 : f32
    %23 = vector.broadcast %cst_25 : f32 to vector<1x64xf32>
    %24 = arith.addf %23, %22 : vector<1x64xf32>
    %25 = arith.divf %23, %24 : vector<1x64xf32>
    %26 = vector.shape_cast %25 : vector<1x64xf32> to vector<1x64x1xf32>
    %27 = vector.broadcast %26 : vector<1x64x1xf32> to vector<1x64x256xf32>
    %28 = arith.mulf %27, %0 : vector<1x64x256xf32>
    %cst_26 = arith.constant 1.000000e+00 : f32
    %29 = vector.broadcast %cst_26 : f32 to vector<1x64x1xf32>
    %30 = arith.subf %29, %26 : vector<1x64x1xf32>
    %31 = vector.broadcast %30 : vector<1x64x1xf32> to vector<1x64x256xf32>
    %32 = arith.mulf %31, %1 : vector<1x64x256xf32>
    %33 = arith.addf %28, %32 : vector<1x64x256xf32>
    %c0_27 = arith.constant 0 : index
    %c0_28 = arith.constant 0 : index
    %c0_29 = arith.constant 0 : index
    %34 = vector.load %arg10[%c0_27, %c0_28, %c0_29] : memref<1x64x256xf32, #tpu.memory_space<vmem>>, vector<1x64x256xf32>
    tpu.vector_store %arg10[%c0_27, %c0_28, %c0_29], %33 {strides = array<i32>} : memref<1x64x256xf32, #tpu.memory_space<vmem>>, vector<1x64x256xf32>,
    return
  }
  func.func @transform_0(%arg0: i32) -> (i32, i32, i32) {
    %c0_i32 = arith.constant 0 : i32
    %c0_i32_0 = arith.constant 0 : i32
    %c0_i32_1 = arith.constant 0 : i32
    return %arg0, %c0_i32, %c0_i32_0 : i32, i32, i32
  }
  func.func @transform_1(%arg0: i32) -> (i32, i32, i32) {
    %c0_i32 = arith.constant 0 : i32
    %c0_i32_0 = arith.constant 0 : i32
    %c0_i32_1 = arith.constant 0 : i32
    return %arg0, %c0_i32, %c0_i32_0 : i32, i32, i32
  }
  func.func @transform_2(%arg0: i32) -> (i32, i32) {
    %c0_i32 = arith.constant 0 : i32
    %c0_i32_0 = arith.constant 0 : i32
    %c0_i32_1 = arith.constant 0 : i32
    return %c0_i32, %c0_i32_0 : i32, i32
  }
  func.func @transform_3(%arg0: i32) -> (i32, i32) {
    %c0_i32 = arith.constant 0 : i32
    %c0_i32_0 = arith.constant 0 : i32
    %c0_i32_1 = arith.constant 0 : i32
    return %c0_i32, %c0_i32_0 : i32, i32
  }
  func.func @transform_4(%arg0: i32) -> (i32, i32) {
    %c0_i32 = arith.constant 0 : i32
    %c0_i32_0 = arith.constant 0 : i32
    %c0_i32_1 = arith.constant 0 : i32
    return %c0_i32, %c0_i32_0 : i32, i32
  }
  func.func @transform_5(%arg0: i32) -> (i32, i32) {
    %c0_i32 = arith.constant 0 : i32
    %c0_i32_0 = arith.constant 0 : i32
    %c0_i32_1 = arith.constant 0 : i32
    return %c0_i32, %c0_i32_0 : i32, i32
  }
  func.func @transform_6(%arg0: i32) -> (i32, i32) {
    %c0_i32 = arith.constant 0 : i32
    %c0_i32_0 = arith.constant 0 : i32
    %c0_i32_1 = arith.constant 0 : i32
    return %c0_i32, %c0_i32_0 : i32, i32
  }
  func.func @transform_7(%arg0: i32) -> (i32, i32) {
    %c0_i32 = arith.constant 0 : i32
    %c0_i32_0 = arith.constant 0 : i32
    %c0_i32_1 = arith.constant 0 : i32
    return %c0_i32, %c0_i32_0 : i32, i32
  }
  func.func @transform_8(%arg0: i32) -> (i32, i32) {
    %c0_i32 = arith.constant 0 : i32
    %c0_i32_0 = arith.constant 0 : i32
    %c0_i32_1 = arith.constant 0 : i32
    return %c0_i32, %c0_i32_0 : i32, i32
  }
  func.func @transform_9(%arg0: i32) -> (i32, i32, i32) {
    %c0_i32 = arith.constant 0 : i32
    %c0_i32_0 = arith.constant 0 : i32
    %c0_i32_1 = arith.constant 0 : i32
    return %arg0, %c0_i32, %c0_i32_0 : i32, i32, i32
  }
}

</mosaic_0001>

<bundles_post_ra>
// kernel: tpu_custom_call.1
= control target key start
LH: loop header
LB: loop body
LE: loop exit
PB: predicated region body
PF: predicated region fallthrough
CT: control target
= control target key end

     0   :  { %s1706_s0 = inlined_call_operand.hbm [shape: f32[2,64,256], index: 0, kind: input, shape index: {}]   ;;  %s1707_s1 = inlined_call_operand.hbm [shape: f32[2,64,256], index: 1, kind: input, shape index: {}]   ;;  %s1708_s2 = inlined_call_operand.vmem [shape: f32[64,64], index: 2, kind: input, shape index: {}]   ;;  %s1709_s3 = inlined_call_operand.hbm [shape: f32[64,64], index: 3, kind: input, shape index: {}]   ;;  %s1710_s4 = inlined_call_operand.vmem [shape: f32[1,64], index: 4, kind: input, shape index: {}]   ;;  %s1711_s5 = inlined_call_operand.vmem [shape: f32[64,16], index: 5, kind: input, shape index: {}]   ;;  %s1712_s6 = inlined_call_operand.vmem [shape: f32[1,16], index: 6, kind: input, shape index: {}]   ;;  %s1713_s7 = inlined_call_operand.vmem [shape: f32[16,64], index: 7, kind: input, shape index: {}]   ;;  %s1714_s8 = inlined_call_operand.vmem [shape: f32[1,64], index: 8, kind: input, shape index: {}]   ;;  %s1715_s9 = inlined_call_operand.hbm [shape: f32[2,64,256], index: 9, kind: output, shape index: {}]  }
   0x1   :  { %1723 = sst [smem:[#allocation19_spill]] %s1706_s0 }
   0x2   :  { %1724 = sst [smem:[#allocation20_spill]] %s1709_s3 }
   0x3   :  { %14 = vsyncpa [#allocation3], 0 }
   0x4   :  { %16 = vsyncpa [#allocation3 + $0x1], 0 }
   0x5   :  { %17 = vsyncpa [#allocation6], 0 }
   0x6   :  { %19 = vsyncpa [#allocation6 + $0x1], 0 }
   0x7   :  { %20 = vsyncpa [#allocation4], 0 }
   0x8   :  { %22 = vsyncpa [#allocation4 + $0x1], 0  ;;  %s1269_s30 = smov 0   ;;  %s1271_s10 = smov 0  }
   0x9   :  { %s1273_s11 = smov 0   ;;  %s1275_s12 = smov 0  }
   0xa LB: > { %1725 = sst [smem:[#allocation13_spill]] %s1198_s30  ;;  %s1290_s13 = sadd.s32 4294967295, %s1210_s12   ;;  %s1210_s12 = sphi %s1275_s12, %s1742_s12   ;;  %s1206_s11 = sphi %s1273_s11, %s1744_s11   ;;  %s1202_s10 = sphi %s1271_s10, %s1746_s10   ;;  %s1198_s30 = sphi %s1269_s30, %s1745_s30  }
   0xb   : > { %1726 = sst [smem:[#allocation14_spill]] %s1206_s11  ;;  %s937_s14 = sadd.s32 4294967294, %s1210_s12  }
   0xc   : > { %p48_p0 = scmp.ne.s32.totalorder %s1202_s10, %s1198_s30  ;;  %p49_p1 = scmp.eq.s32.totalorder %s1290_s13, 0 }
   0xd   : > { %p245_p2 = scmp.eq.s32.totalorder %s1290_s13, 1  ;;  %p251_p3 = scmp.eq.s32.totalorder %s937_s14, 1 }
   0xe   : > { %p1299_p4 = por %p49_p1, %p48_p0  ;;  %p938_p5 = scmp.ge.s32.totalorder %s1210_s12, 1 }
   0xf   : > { %p1304_p6 = por %p251_p3, %p48_p0  ;;  %p258_p7 = scmp.lt.s32.totalorder %s1210_s12, 3 }
  0x10   : > { %s1730_s3 = sld [smem:[#allocation20_spill]]  ;;  %s1212_s21 = smov [#allocation7]  }
  0x11   : > { %s1728_s16 = scalar_select %p1304_p6, 1, 0 }
  0x12   : > { %p1312_p8 = pnand %p938_p5, %p258_p7  ;;  %s274_s22 = sshll.u32 %s1212_s21, 4  ;;  %s275_s22 = int_to_ptr.vmem [resolvable:$true] %s274_s22 }
  0x13   : > { %1729 = sst [smem:[#allocation15_spill]] %s1728_s16  ;;  %s1322_s23 = sadd.s32 1, %s1210_s12  }
  0x14   : > { %p975_p9 = pneg %p1312_p8  ;;  %1732 = sst [smem:[#allocation16_spill]] %s1322_s23 }
  0x15   : > { %s1213_s24 = smov 128   ;;  %s1214_s25 = smov 8  }
  0x16   : > { %s272_s19 = sshll.u32 %s1730_s3, 4  ;;  %p976_p10 = pnand %p975_p9, %p49_p1  ;;  %s273_s19 = int_to_ptr.hbm [resolvable:$true] %s272_s19 }
  0x17   : > { %s32_s26 = ssub.s32 %s1210_s12, %s1322_s23  ;;  %s35_s27 = sadd.s32 1, %s1206_s11 }
  0x18   : > { %978 = dma.hbm_to_vmem [thread:$0]  (!%p976_p10), %s273_s19, 1024, %s275_s22, [#allocation6], %s1213_s24, %s1213_s24, %s1214_s25  }
  0x19   : > { %p33_p12 = scmp.eq.s32.totalorder %s32_s26, 0  ;;  %p42_p13 = scmp.ne.s32.totalorder %s1206_s11, %s1202_s10 }
  0x1a   : > { %p43_p0 = scmp.eq.s32.totalorder %s1210_s12, 0  ;;  %p991_p3 = scmp.lt.s32.totalorder %s1210_s12, 2 }
  0x1b   : > { %s1332_s28 = scalar_select %p33_p12, %s1206_s11, %s35_s27  }
  0x1c   : > { %p44_p5 = por %p43_p0, %p42_p13  ;;  %p1336_p7 = por %p245_p2, %p42_p13 }
  0x1d   : > { %1733 = sst [smem:[#allocation17_spill]] %s1332_s28  ;;  %s303_s14 = sand.u32 1, %s1206_s11  }
  0x1e   : > { %s1734_s29 = scalar_select %p1336_p7, 1, 0 }
  0x1f   : > { %s962_s17 = sshll.u32 %s1210_s12, 7  ;;  %s1342_s18 = sshll.u32 %s303_s14, 7 }
  0x20   : > { %1735 = sst [smem:[#allocation18_spill]] %s1734_s29  ;;  %s307_s25 = scalar_lea.vmem [#allocation2], %s1342_s18 }
  0x21   : > { %s1736_s0 = sld [smem:[#allocation19_spill]]  ;;  %s315_s26 = sshll.u32 %s307_s25, 4  ;;  %s316_s26 = int_to_ptr.vmem [resolvable:$true] %s315_s26 }
  0x22   : > { %p1350_p9 = pnand %p991_p3, %p44_p5  ;;  %s334_s11 = scalar_lea.hbm %s1707_s1, %s962_s17 }
  0x23   : > { %s304_s23 = scalar_lea.sflag [#allocation3], %s303_s14 }
  0x24   : > { %p1080_p10 = pneg %p1350_p9 }
  0x27   : > { %s312_s22 = scalar_lea.hbm %s1736_s0, %s962_s17  ;;  %s1083_s16 = scalar_lea.hbm %s1736_s0, 256 }
  0x28   : > { %s313_s24 = sshll.u32 %s312_s22, 4  ;;  %s314_s24 = int_to_ptr.hbm [resolvable:$true] %s313_s24 }
  0x29   : > { %s1076_s19 = sshra.s32 %s314_s24, 4  ;;  %s1077_s19 = int_to_ptr.hbm [resolvable:$true] %s1076_s19 }
  0x2a   : > { %s1078_s21 = scalar_lea.hbm %s1077_s19, 128  ;;  %p1084_p0 = scmp.lt.s32.totalorder %s1077_s19, %s1736_s0 }
  0x2b   : > { %p1079_p2 = scmp.ne.s32.totalorder %s1077_s19, %s1078_s21  ;;  %p1085_p3 = scmp.lt.s32.totalorder %s1083_s16, %s1078_s21 }
  0x2d   : > { %p1081_p12 = pnand %p1080_p10, %p1079_p2  ;;  %p1086_p5 = por %p1085_p3, %p1084_p0 }
  0x2f   : > { %p1082_p13 = pneg %p1081_p12 }
  0x31   : > { %p1087_p11 = pnand %p1086_p5, %p1082_p13 }
  0x33   : > { %1090 = shalt.err (!%p1087_p11)
}
  0x34   : > { %s1215_s28 = smov 256   ;;  %s1216_s14 = smov 16  }
  0x35   : > { %982 = dma.hbm_to_vmem [thread:$0]  (!%p1350_p9), %s314_s24, 2048, %s316_s26, %s304_s23, %s1215_s28, %s1215_s28, %s1216_s14  }
  0x36   : > { %s335_s17 = sshll.u32 %s334_s11, 4  ;;  %s329_s29 = scalar_lea.vmem [#allocation5], %s1342_s18  ;;  %s336_s17 = int_to_ptr.hbm [resolvable:$true] %s335_s17 }
  0x37   : > { %s337_s22 = sshll.u32 %s329_s29, 4  ;;  %s325_s25 = sand.u32 1, %s1210_s12   ;;  %s338_s22 = int_to_ptr.vmem [resolvable:$true] %s337_s22 }
  0x38   : > { %s326_s30 = scalar_lea.sflag [#allocation6], %s325_s25  ;;  %s1106_s19 = sshra.s32 %s336_s17, 4  ;;  %s1107_s19 = int_to_ptr.hbm [resolvable:$true] %s1106_s19 }
  0x39   : > { %s1108_s16 = scalar_lea.hbm %s1107_s19, 128  ;;  %s1113_s0 = scalar_lea.hbm %s1707_s1, 256 }
  0x3a   : > { %p1109_p2 = scmp.ne.s32.totalorder %s1107_s19, %s1108_s16  ;;  %p1114_p13 = scmp.lt.s32.totalorder %s1107_s19, %s1707_s1 }
  0x3b   : > { %p1115_p0 = scmp.lt.s32.totalorder %s1113_s0, %s1108_s16 }
  0x3c   : > { %p1111_p11 = pnand %p1109_p2, %p1080_p10 }
  0x3d   : > { %p1116_p3 = por %p1115_p0, %p1114_p13 }
  0x3e   : > { %p1112_p12 = pneg %p1111_p11 }
  0x40   : > { %p1117_p5 = pnand %p1116_p3, %p1112_p12 }
  0x42   : > { %1120 = shalt.err (!%p1117_p5)
}
  0x43   : > { %985 = dma.hbm_to_vmem [thread:$0]  (!%p1350_p9), %s336_s17, 2048, %s338_s22, %s326_s30, %s1215_s28, %s1215_s28, %s1216_s14  }
  0x44   : > { %349 = sbr.rel (%p1312_p8) target bundleno = 831 (0x33f), region = 56  ;;  %s1386_s29 = sand.u32 (!%p1312_p8), 1, %s1202_s10  }
  0x45   : > { %s1389_s18 = sshll.u32 (!%p1312_p8), %s1386_s29, 7  ;;  %s352_s24 = scalar_lea.sflag (!%p1312_p8), [#allocation3], %s1386_s29 }
  0x46   : > { %s1393_s0 = scalar_lea.vmem (!%p1312_p8), [#allocation2], %s1389_s18 }
  0x49   : > { %1181 = dma.done.wait (%p1299_p4), %s352_s24, 2048  }
  0x4a   : > { %1183 = vsyncadd (%p1299_p4), %s352_s24, 4294965248  ;;  %s361_s20 = sand.u32 1, %s1290_s13   ;;  %s1401_s27 = scalar_lea.vmem [#allocation5], %s1389_s18 }
  0x4b   : > { %s362_s26 = scalar_lea.sflag [#allocation6], %s361_s20 }
  0x4c   : > { %1185 = dma.done.wait (%p1299_p4), %s362_s26, 2048  }
  0x4d   : > { %1187 = vsyncadd (%p1299_p4), %s362_s26, 4294965248 }
  0x4e   : > { %1189 = dma.done.wait (%p49_p1), [#allocation6], 1024  }
  0x4f   : > { %1191 = vsyncadd (%p49_p1), [#allocation6], 4294966272  ;;  %v1412_v0 = vld [vmem:[%s1401_s27] sm:$0xff]  ;;  %v1415_v1 = vld [vmem:[%s1401_s27 + $0x8] sm:$0xff]  ;;  %vm520_vm0 = vcmask 130112   ;;  %vm524_vm1 = vcmask 195712  }
  0x50   : > { %v1418_v2 = vld [vmem:[%s1393_s0] sm:$0xff]  ;;  %v467_v3 = vadd.f32 %v1415_v1, %v1412_v0  ;;  %v1423_v4 = vld [vmem:[%s1393_s0 + $0x8] sm:$0xff]  ;;  %v1436_v9 = vld [vmem:[%s1401_s27 + $0x10] sm:$0xff]  ;;  %vm528_vm2 = vcmask 261312   ;;  %vm532_vm3 = vcmask 326912   ;;  %vm536_vm4 = vcmask 392512  }
  0x51   : > { %v1426_v5 = vld [vmem:[%s1393_s0 + $0x20] sm:$0xff]  ;;  %v1429_v6 = vld [vmem:[%s1393_s0 + $0x28] sm:$0xff]  ;;  %v443_v7 = vadd.f32 %v1423_v4, %v1418_v2  ;;  %v1439_v10 = vld [vmem:[%s1401_s27 + $0x18] sm:$0xff]  ;;  %vm540_vm5 = vcmask 458112   ;;  %vm544_vm6 = vcmask 523712   ;;  %vm546_vm7 = vcmask 523264  }
  0x52   : > { %v449_v8 = vadd.f32 %v1429_v6, %v1426_v5  ;;  %468 = vadd.xlane.f32.xlu1 %v467_v3  ;;  %v1442_v11 = vld [vmem:[%s1393_s0 + $0x10] sm:$0xff]  ;;  %v1445_v12 = vld [vmem:[%s1393_s0 + $0x18] sm:$0xff]  ;;  %v1448_v13 = vld [vmem:[%s1401_s27 + $0x20] sm:$0xff]  ;;  %v470_v15 = vadd.f32 %v1439_v10, %v1436_v9  ;;  %vm652_vm8 = vcmask 130048   ;;  %s1626_s30 = scalar_lea.vmem [#allocation8], %s1389_s18  ;;  %s964_s18 = sshll.u32 %s1290_s13, 7 }
  0x53   : > { %444 = vadd.xlane.f32.xlu0 %v443_v7  ;;  %v1451_v14 = vld [vmem:[%s1401_s27 + $0x28] sm:$0xff]  ;;  %v446_v16 = vadd.f32 %v1445_v12, %v1442_v11  ;;  %v1460_v18 = vld [vmem:[%s1401_s27 + $0x30] sm:$0xff]  ;;  %v1463_v19 = vld [vmem:[%s1401_s27 + $0x38] sm:$0xff]  ;;  %s828_s21 = scalar_lea.hbm %s1715_s9, %s964_s18  ;;  %s829_s3 = sshll.u32 %s1626_s30, 4  ;;  %s830_s3 = int_to_ptr.vmem [resolvable:$true] %s829_s3 }
  0x54   : > { %450 = vadd.xlane.f32.xlu2 %v449_v8  ;;  %v473_v17 = vadd.f32 %v1451_v14, %v1448_v13  ;;  %v1466_v20 = vld [vmem:[%s1393_s0 + $0x30] sm:$0xff]  ;;  %v1469_v21 = vld [vmem:[%s1393_s0 + $0x38] sm:$0xff]  ;;  %v1472_v22 = vld [vmem:[%s1393_s0 + $0x40] sm:$0xff]  ;;  %v476_v24 = vadd.f32 %v1463_v19, %v1460_v18  ;;  %s831_s23 = sshll.u32 %s828_s21, 4  ;;  %s817_s13 = scalar_lea.sflag [#allocation4], %s1386_s29  ;;  %s832_s23 = int_to_ptr.hbm [resolvable:$true] %s831_s23 }
  0x55   : > { %v1475_v23 = vld [vmem:[%s1393_s0 + $0x48] sm:$0xff]  ;;  %v452_v25 = vadd.f32 %v1469_v21, %v1466_v20  ;;  %v1484_v27 = vld [vmem:[%s1393_s0 + $0x50] sm:$0xff]  ;;  %v1487_v28 = vld [vmem:[%s1393_s0 + $0x58] sm:$0xff]  ;;  %s1150_s24 = sshra.s32 %s832_s23, 4  ;;  %s1151_s24 = int_to_ptr.hbm [resolvable:$true] %s1150_s24 }
  0x56   : > { %v455_v26 = vadd.f32 %v1475_v23, %v1472_v22  ;;  %v1490_v29 = vld [vmem:[%s1401_s27 + $0x40] sm:$0xff]  ;;  %v1493_v30 = vld [vmem:[%s1401_s27 + $0x48] sm:$0xff]  ;;  %v1496_v31 = vld [vmem:[%s1401_s27 + $0x50] sm:$0xff]  ;;  %v458_v33 = vadd.f32 %v1487_v28, %v1484_v27  ;;  %p1157_p9 = scmp.lt.s32.totalorder %s1151_s24, %s1715_s9 }
  0x57   : > { %v1499_v32 = vld [vmem:[%s1401_s27 + $0x58] sm:$0xff]  ;;  %v479_v34 = vadd.f32 %v1493_v30, %v1490_v29  ;;  %v1508_v36 = vld [vmem:[%s1401_s27 + $0x60] sm:$0xff]  ;;  %v1511_v37 = vld [vmem:[%s1401_s27 + $0x68] sm:$0xff] }
  0x58   : > { %v482_v35 = vadd.f32 %v1499_v32, %v1496_v31  ;;  %v1514_v38 = vld [vmem:[%s1393_s0 + $0x60] sm:$0xff]  ;;  %v1517_v39 = vld [vmem:[%s1393_s0 + $0x68] sm:$0xff]  ;;  %v1520_v40 = vld [vmem:[%s1393_s0 + $0x70] sm:$0xff]  ;;  %v485_v42 = vadd.f32 %v1511_v37, %v1508_v36 }
  0x59   : > { %v1523_v41 = vld [vmem:[%s1393_s0 + $0x78] sm:$0xff]  ;;  %v461_v43 = vadd.f32 %v1517_v39, %v1514_v38  ;;  %v1532_v45 = vld [vmem:[%s1401_s27 + $0x70] sm:$0xff]  ;;  %v496_v50 = vld [vmem:[%s1708_s2 + $0x28] sm:$0xff]  ;;  %s1152_s0 = scalar_lea.hbm %s1151_s24, 128 }
  0x5a   : > { %471 = vadd.xlane.f32.xlu1 %v470_v15  ;;  %v464_v44 = vadd.f32 %v1523_v41, %v1520_v40  ;;  %v1535_v46 = vld [vmem:[%s1401_s27 + $0x78] sm:$0xff]  ;;  %v497_v49 = vld [vmem:[%s1708_s2 + $0x30] sm:$0xff]  ;;  %v495_v51 = vld [vmem:[%s1708_s2 + $0x20] sm:$0xff]  ;;  %p1153_p1 = scmp.ne.s32.totalorder %s1151_s24, %s1152_s0  ;;  %s1156_s27 = scalar_lea.hbm %s1715_s9, 256 }
  0x5b   : > { %447 = vadd.xlane.f32.xlu0 %v446_v16  ;;  %v488_v47 = vadd.f32 %v1535_v46, %v1532_v45  ;;  %v498_v48 = vld [vmem:[%s1708_s2 + $0x38] sm:$0xff]  ;;  %v505_v54 = vld [vmem:[#allocation7 + $0x30] sm:$0xff]  ;;  %v504_v59 = vld [vmem:[#allocation7 + $0x28] sm:$0xff]  ;;  %p1158_p10 = scmp.lt.s32.totalorder %s1156_s27, %s1152_s0 }
  0x5c   : > { %474 = vadd.xlane.f32.xlu2 %v473_v17  ;;  %602 = vmatpush.msra.mxu1 %v498_v48  ;;  %v506_v52 = vld [vmem:[#allocation7 + $0x38] sm:$0xff]  ;;  %v493_v55 = vld [vmem:[%s1708_s2 + $0x10] sm:$0xff]  ;;  %v492_v60 = vld [vmem:[%s1708_s2 + $0x8] sm:$0xff]  ;;  %p1154_p4 = pnand %p1153_p1, %p1336_p7 }
  0x5d   : > { %v494_v53 = vld [vmem:[%s1708_s2 + $0x18] sm:$0xff]  ;;  %557 = vmatpush.msra.mxu0 %v506_v52  ;;  %v503_v61 = vld [vmem:[#allocation7 + $0x20] sm:$0xff]  ;;  %v501_v3 = vld [vmem:[#allocation7 + $0x10] sm:$0xff]  ;;  %p1159_p2 = por %p1158_p10, %p1157_p9 }
  0x5e   : > { %603 = vmatpush.msra.mxu1 %v497_v49  ;;  %v491_v62 = vld [vmem:[%s1708_s2] sm:$0xff]  ;;  %v502_v63 = vld [vmem:[#allocation7 + $0x18] sm:$0xff]  ;;  %v500_v16 = vld [vmem:[#allocation7 + $0x8] sm:$0xff]  ;;  %p1155_p8 = pneg %p1154_p4 }
  0x5f   : > { %558 = vmatpush.msra.mxu0 %v505_v54  ;;  %v499_v17 = vld [vmem:[#allocation7] sm:$0xff] }
  0x60   : > { %604 = vmatpush.msra.mxu1 %v496_v50  ;;  %p1160_p11 = pnand %p1159_p2, %p1155_p8 }
  0x61   : > { %559 = vmatpush.msra.mxu0 %v504_v59 }
  0x62   : > { %477 = vadd.xlane.f32.xlu1 %v476_v24  ;;  %605 = vmatpush.msra.mxu1 %v495_v51  ;;  %v515_v24 = vlaneseq }
  0x63   : > { %453 = vadd.xlane.f32.xlu0 %v452_v25  ;;  %560 = vmatpush.msra.mxu0 %v503_v61  ;;  %v623_v25 = vld [vmem:[%s1711_s5 + $0x38] sm:$0xff] }
  0x64   : > { %456 = vadd.xlane.f32.xlu2 %v455_v26  ;;  %606 = vmatpush.msra.mxu1 %v494_v53  ;;  %v622_v26 = vld [vmem:[%s1711_s5 + $0x30] sm:$0xff] }
  0x65   : > { %561 = vmatpush.msra.mxu0 %v502_v63  ;;  %636 = vmatpush.msra.mxu2 %v623_v25 }
  0x66   : > { %607 = vmatpush.msra.mxu1 %v493_v55 }
  0x67   : > { %562 = vmatpush.msra.mxu0 %v501_v3  ;;  %637 = vmatpush.msra.mxu2 %v622_v26 }
  0x68   : > { %608 = vmatpush.msra.mxu1 %v492_v60 }
  0x69   : > { %563 = vmatpush.msra.mxu0 %v500_v16 }
  0x6a   : > { %459 = vadd.xlane.f32.xlu1 %v458_v33  ;;  %609 = vmatpush.msra.mxu1 %v491_v62 }
  0x6b   : > { %480 = vadd.xlane.f32.xlu0 %v479_v34  ;;  %564 = vmatpush.msra.mxu0 %v499_v17  ;;  %v516_v34 = vand.u32 127, %v515_v24 }
  0x6c   : > { %483 = vadd.xlane.f32.xlu2 %v482_v35 }
  0x6d   : > { %v526_v48 = vadd.s32 4294967272, %v516_v34  ;;  %v530_v53 = vadd.s32 4294967264, %v516_v34  ;;  %v534_v60 = vadd.s32 4294967256, %v516_v34  ;;  %v542_v16 = vadd.s32 4294967240, %v516_v34 }
  0x72   : > { %486 = vadd.xlane.f32.xlu1 %v485_v42 }
  0x73   : > { %462 = vadd.xlane.f32.xlu0 %v461_v43  ;;  %v518_v43 = vadd.s32 4294967288, %v516_v34 }
  0x74   : > { %465 = vadd.xlane.f32.xlu2 %v464_v44  ;;  %v522_v44 = vadd.s32 4294967280, %v516_v34 }
  0x7b   : > { %489 = vadd.xlane.f32.xlu0 %v488_v47 }
  0xc5   : > { %v469_v56 = vpop.xlane.xlu1 %468 }
  0xc6   : > { %v445_v57 = vpop.xlane.xlu0 %444  ;;  %v517_v61 = vperm.slane %v469_v56, %v516_v34 }
  0xc7   : > { %v451_v58 = vpop.xlane.xlu2 %450  ;;  %v577_v49 = vperm.slane %v445_v57, %v516_v34 }
  0xc8   : > { %v580_v52 = vperm.slane %v451_v58, %v522_v44 }
  0xcd   : > { %v472_v7 = vpop.xlane.xlu1 %471 }
  0xce   : > { %v448_v8 = vpop.xlane.xlu0 %447  ;;  %v519_v62 = vperm.slane %v472_v7, %v518_v43 }
  0xcf   : > { %v475_v15 = vpop.xlane.xlu2 %474  ;;  %v578_v47 = vperm.slane %v448_v8, %v518_v43  ;;  %v538_v8 = vadd.s32 4294967248, %v516_v34 }
  0xd0   : > { %v521_v58 = vsel %vm520_vm0, %v519_v62, %v517_v61  ;;  %v523_v25 = vperm.slane %v475_v15, %v522_v44 }
  0xd1   : > { %v579_v55 = vsel %vm520_vm0, %v578_v47, %v577_v49 }
  0xd2   : > { %v581_v63 = vsel %vm524_vm1, %v580_v52, %v579_v55 }
  0xd5   : > { %v478_v33 = vpop.xlane.xlu1 %477 }
  0xd6   : > { %v454_v35 = vpop.xlane.xlu0 %453 }
  0xd7   : > { %v457_v42 = vpop.xlane.xlu2 %456  ;;  %v582_v59 = vperm.slane %v454_v35, %v526_v48  ;;  %v527_v35 = vperm.slane %v478_v33, %v526_v48 }
  0xd8   : > { %v584_v3 = vperm.slane %v457_v42, %v530_v53 }
  0xd9   : > { %v583_v57 = vsel %vm528_vm2, %v582_v59, %v581_v63  ;;  %v621_v63 = vld [vmem:[%s1711_s5 + $0x28] sm:$0xff] }
  0xda   : > { %v585_v56 = vsel %vm532_vm3, %v584_v3, %v583_v57  ;;  %638 = vmatpush.msra.mxu2 %v621_v63  ;;  %v618_v3 = vld [vmem:[%s1711_s5 + $0x10] sm:$0xff] }
  0xdd   : > { %v460_v54 = vpop.xlane.xlu1 %459 }
  0xde   : > { %v481_v50 = vpop.xlane.xlu0 %480  ;;  %v586_v17 = vperm.slane %v460_v54, %v534_v60  ;;  %v525_v54 = vsel %vm524_vm1, %v523_v25, %v521_v58  ;;  %v614_v58 = vld [vmem:[%s1710_s4] sm:$0x1] }
  0xdf   : > { %v484_v51 = vpop.xlane.xlu2 %483  ;;  %v531_v34 = vperm.slane %v481_v50, %v530_v53  ;;  %v529_v44 = vsel %vm528_vm2, %v527_v35, %v525_v54  ;;  %v649_v35 = vld [vmem:[%s1713_s7] sm:$0xff] }
  0xe0   : > { %v587_v42 = vsel %vm536_vm4, %v586_v17, %v585_v56  ;;  %v535_v55 = vperm.slane %v484_v51, %v534_v60  ;;  %v620_v51 = vld [vmem:[%s1711_s5 + $0x20] sm:$0xff]  ;;  %v619_v60 = vld [vmem:[%s1711_s5 + $0x18] sm:$0xff] }
  0xe1   : > { %v533_v33 = vsel %vm532_vm3, %v531_v34, %v529_v44  ;;  %639 = vmatpush.msra.mxu2 %v620_v51  ;;  %v624_v56 = vld [vmem:[%s1712_s6] sm:$0x1]  ;;  %v697_v34 = vshrl.u32 %v515_v24, 7 }
  0xe2   : > { %v537_v61 = vsel %vm536_vm4, %v535_v55, %v533_v33  ;;  %v651_v54 = vld [vmem:[%s1714_s8] sm:$0x1] }
  0xe3   : > { %640 = vmatpush.msra.mxu2 %v619_v60  ;;  %1033 = vset.pattern.permute.xlu1 %v697_v34 }
  0xe5   : > { %v487_v49 = vpop.xlane.xlu1 %486  ;;  %641 = vmatpush.msra.mxu2 %v618_v3 }
  0xe6   : > { %v463_v26 = vpop.xlane.xlu0 %462  ;;  %v539_v48 = vperm.slane %v487_v49, %v538_v8  ;;  %v710_v49 = vadd.s32 16, %v697_v34 }
  0xe7   : > { %v466_v47 = vpop.xlane.xlu2 %465  ;;  %v588_v7 = vperm.slane %v463_v26, %v538_v8  ;;  %v617_v8 = vld [vmem:[%s1711_s5 + $0x8] sm:$0xff] }
  0xe8   : > { %v590_v43 = vperm.slane %v466_v47, %v542_v16  ;;  %v541_v53 = vsel %vm540_vm5, %v539_v48, %v537_v61  ;;  %642 = vmatpush.msra.mxu2 %v617_v8  ;;  %v650_v47 = vld [vmem:[%s1713_s7 + $0x8] sm:$0xff]  ;;  %1035 = vset.pattern.permute.xlu0 %v710_v49 }
  0xe9   : > { %v589_v52 = vsel %vm540_vm5, %v588_v7, %v587_v42  ;;  %670 = vmatpush.msra.mxu3 %v650_v47 }
  0xea   : > { %v591_v15 = vsel %vm544_vm6, %v590_v43, %v589_v52  ;;  %v704_v52 = vadd.s32 8, %v697_v34 }
  0xeb   : > { %953 = vmatmul.msk.f32.vlgmr.msra.gmra.mxu1 %vm546_vm7, %v591_v15  ;;  %671 = vmatpush.msra.mxu3 %v649_v35 }
  0xec   : > { %1034 = vset.pattern.permute.xlu2 %v704_v52 }
  0xee   : > { %v490_v59 = vpop.xlane.xlu0 %489 }
  0xef   : > { %v543_v50 = vperm.slane %v490_v59, %v542_v16  ;;  %v616_v16 = vld [vmem:[%s1711_s5] sm:$0xff] }
  0xf0   : > { %643 = vmatpush.msra.mxu2 %v616_v16  ;;  %v716_v16 = vadd.s32 24, %v697_v34 }
  0xf1   : > { %v545_v62 = vsel %vm544_vm6, %v543_v50, %v541_v53 }
  0xf2   : > { %952 = vmatmul.msk.f32.vlgmr.msra.gmra.mxu0 %vm546_vm7, %v545_v62 }
 0x168   : > { %v611_v57 = vpop.f32.mrf.mxu1 }
 0x16f   : > { %v566_v17 = vpop.f32.mrf.mxu0 }
 0x170   : > { %v612_v25 = vadd.f32 %v611_v57, %v566_v17  ;;  %v722_v57 = vadd.s32 32, %v697_v34  ;;  %v740_v17 = vadd.s32 56, %v697_v34 }
 0x172   : > { %v615_v26 = vadd.f32 %v614_v58, %v612_v25  ;;  %v728_v58 = vadd.s32 40, %v697_v34  ;;  %v734_v25 = vadd.s32 48, %v697_v34 }
 0x174   : > { %954 = vmatmul.msk.f32.vlgmr.msra.gmra.mxu2 %vm546_vm7, %v615_v26 }
 0x1f7   : > { %v645_v7 = vpop.f32.mrf.mxu2 }
 0x1f8   : > { %v646_v43 = vadd.f32 %v645_v7, %v624_v56 }
 0x1fa   : > { %v648_v42 = vmax.f32 %v646_v43, 0.0 }
 0x1fc   : > { %955 = vmatmul.msk.f32.vlgmr.msra.gmra.mxu3 %vm652_vm8, %v648_v42 }
 0x27f   : > { %v673_v15 = vpop.f32.mrf.mxu3 }
 0x280   : > { %v674_v44 = vadd.f32 %v673_v15, %v651_v54 }
 0x282   : > { %v956_v55 = vmul.f32 -1.442695, %v674_v44 }
 0x284   : > { %1042 = vpow2.f32 %v956_v55 }
 0x28a   : > { %v1043_v33 = vpop.eup %1042 }
 0x28b   : > { %v679_v48 = vadd.f32 1.0, %v1043_v33 }
 0x28d   : > { %1044 = vrcp.f32 %v679_v48  ;;  %v691_v24 = vand.u32 2147483648, %v679_v48  ;;  %v689_v62 = vand.u32 2147483647, %v679_v48  ;;  %vm685_vm10 = vweird.f32 %v679_v48 }
 0x28f   : > { %v692_v51 = vor.u32 1.1754944e-38, %v691_v24  ;;  %vm690_vm12 = vcmp.eq.f32.partialorder %v689_v62, 8.507059e+37 }
 0x293   : > { %v1045_v59 = vpop.eup %1044 }
 0x294   : > { %v681_v61 = vmul.f32 %v1045_v59, %v679_v48  ;;  %vm686_vm9 = vweird.f32 %v1045_v59 }
 0x295   : > { %vm687_vm11 = vmor %vm685_vm10, %vm686_vm9 }
 0x296   : > { %v682_v50 = vsub.f32 1.0, %v681_v61 }
 0x298   : > { %v683_v53 = vmul.f32 %v1045_v59, %v682_v50 }
 0x29a   : > { %v684_v63 = vadd.f32 %v1045_v59, %v683_v53 }
 0x29c   : > { %v688_v60 = vsel %vm687_vm11, %v1045_v59, %v684_v63 }
 0x29d   : > { %v693_v3 = vsel %vm690_vm12, %v692_v51, %v688_v60 }
 0x29e   : > { %v695_v8 = vperm.slane %v693_v3, 0 }
 0x2a0   : > { %712 = vperm.xlu0 %1035, %v695_v8   ;;  %706 = vperm.xlu2 %1034, %v695_v8  }
 0x2a1   : > { %700 = vperm.xlu1 %1033, %v695_v8  }
 0x2a8   : > { %1036 = vset.pattern.permute.xlu2 %v716_v16  ;;  %1041 = vset.pattern.permute.xlu0 %v740_v17 }
 0x2a9   : > { %1037 = vset.pattern.permute.xlu1 %v722_v57 }
 0x2b0   : > { %718 = vperm.xlu2 %1036, %v695_v8  }
 0x2b1   : > { %724 = vperm.xlu1 %1037, %v695_v8  }
 0x2b8   : > { %1038 = vset.pattern.permute.xlu2 %v728_v58 }
 0x2b9   : > { %1039 = vset.pattern.permute.xlu1 %v734_v25 }
 0x2c0   : > { %730 = vperm.xlu2 %1038, %v695_v8  }
 0x2c1   : > { %736 = vperm.xlu1 %1039, %v695_v8  }
 0x2c8   : > { %1040 = vset.pattern.permute.xlu2 %v740_v17 }
 0x2d0   : > { %742 = vperm.xlu2 %1040, %v695_v8  }
 0x2fa   : > { %v707_v26 = vpop.permute.xlu2 %706 }
 0x2fb   : > { %v761_v47 = vsub.f32 1.0, %v707_v26  ;;  %v746_v35 = vmul.f32 %v707_v26, %v1442_v11  ;;  %v747_v56 = vmul.f32 %v707_v26, %v1445_v12 }
 0x2fd   : > { %v770_v7 = vmul.f32 %v761_v47, %v1436_v9  ;;  %v771_v43 = vmul.f32 %v761_v47, %v1439_v10 }
 0x2ff   : > { %v786_v42 = vadd.f32 %v770_v7, %v746_v35  ;;  %v787_v49 = vadd.f32 %v771_v43, %v747_v56 }
 0x301   : > { %802 = vst [vmem:[%s1626_s30 + $0x10] sm:$0xff] %v786_v42 }
 0x302   : > { %803 = vst [vmem:[%s1626_s30 + $0x18] sm:$0xff] %v787_v49 }
 0x30a   : > { %v719_v34 = vpop.permute.xlu2 %718 }
 0x30b   : > { %v763_v52 = vsub.f32 1.0, %v719_v34  ;;  %v750_v11 = vmul.f32 %v719_v34, %v1466_v20  ;;  %v751_v12 = vmul.f32 %v719_v34, %v1469_v21 }
 0x30d   : > { %v774_v9 = vmul.f32 %v763_v52, %v1460_v18  ;;  %v775_v10 = vmul.f32 %v763_v52, %v1463_v19 }
 0x30f   : > { %v790_v54 = vadd.f32 %v774_v9, %v750_v11  ;;  %v791_v15 = vadd.f32 %v775_v10, %v751_v12 }
 0x311   : > { %806 = vst [vmem:[%s1626_s30 + $0x30] sm:$0xff] %v790_v54 }
 0x312   : > { %807 = vst [vmem:[%s1626_s30 + $0x38] sm:$0xff] %v791_v15  ;;  %v713_v44 = vpop.permute.xlu0 %712 }
 0x313   : > { %v762_v55 = vsub.f32 1.0, %v713_v44  ;;  %v701_v33 = vpop.permute.xlu1 %700  ;;  %v748_v59 = vmul.f32 %v713_v44, %v1426_v5  ;;  %v749_v20 = vmul.f32 %v713_v44, %v1429_v6 }
 0x314   : > { %v760_v48 = vsub.f32 1.0, %v701_v33  ;;  %v744_v21 = vmul.f32 %v701_v33, %v1418_v2  ;;  %v745_v61 = vmul.f32 %v701_v33, %v1423_v4 }
 0x315   : > { %v772_v18 = vmul.f32 %v762_v55, %v1448_v13  ;;  %v773_v19 = vmul.f32 %v762_v55, %v1451_v14 }
 0x316   : > { %v768_v50 = vmul.f32 %v760_v48, %v1412_v0  ;;  %v769_v24 = vmul.f32 %v760_v48, %v1415_v1 }
 0x317   : > { %v788_v53 = vadd.f32 %v772_v18, %v748_v59  ;;  %v789_v62 = vadd.f32 %v773_v19, %v749_v20 }
 0x318   : > { %v784_v5 = vadd.f32 %v768_v50, %v744_v21  ;;  %v785_v63 = vadd.f32 %v769_v24, %v745_v61 }
 0x319   : > { %804 = vst [vmem:[%s1626_s30 + $0x20] sm:$0xff] %v788_v53 }
 0x31a   : > { %805 = vst [vmem:[%s1626_s30 + $0x28] sm:$0xff] %v789_v62  ;;  %v731_v6 = vpop.permute.xlu2 %730 }
 0x31b   : > { %800 = vst [vmem:[%s1626_s30] sm:$0xff] %v784_v5  ;;  %v765_v13 = vsub.f32 1.0, %v731_v6  ;;  %v754_v2 = vmul.f32 %v731_v6, %v1484_v27  ;;  %v755_v4 = vmul.f32 %v731_v6, %v1487_v28 }
 0x31c   : > { %801 = vst [vmem:[%s1626_s30 + $0x8] sm:$0xff] %v785_v63 }
 0x31d   : > { %v778_v0 = vmul.f32 %v765_v13, %v1496_v31  ;;  %v779_v1 = vmul.f32 %v765_v13, %v1499_v32 }
 0x31f   : > { %v794_v14 = vadd.f32 %v778_v0, %v754_v2  ;;  %v795_v51 = vadd.f32 %v779_v1, %v755_v4 }
 0x321   : > { %810 = vst [vmem:[%s1626_s30 + $0x50] sm:$0xff] %v794_v14 }
 0x322   : > { %811 = vst [vmem:[%s1626_s30 + $0x58] sm:$0xff] %v795_v51 }
 0x323   : > { %v725_v60 = vpop.permute.xlu1 %724 }
 0x324   : > { %v764_v3 = vsub.f32 1.0, %v725_v60  ;;  %v752_v8 = vmul.f32 %v725_v60, %v1472_v22  ;;  %v753_v16 = vmul.f32 %v725_v60, %v1475_v23 }
 0x326   : > { %v776_v27 = vmul.f32 %v764_v3, %v1490_v29  ;;  %v777_v28 = vmul.f32 %v764_v3, %v1493_v30 }
 0x328   : > { %v792_v31 = vadd.f32 %v776_v27, %v752_v8  ;;  %v793_v57 = vadd.f32 %v777_v28, %v753_v16 }
 0x32a   : > { %808 = vst [vmem:[%s1626_s30 + $0x40] sm:$0xff] %v792_v31  ;;  %v743_v32 = vpop.permute.xlu2 %742 }
 0x32b   : > { %809 = vst [vmem:[%s1626_s30 + $0x48] sm:$0xff] %v793_v57  ;;  %v767_v17 = vsub.f32 1.0, %v743_v32  ;;  %v758_v58 = vmul.f32 %v743_v32, %v1520_v40  ;;  %v759_v22 = vmul.f32 %v743_v32, %v1523_v41 }
 0x32d   : > { %v782_v25 = vmul.f32 %v767_v17, %v1532_v45  ;;  %v783_v23 = vmul.f32 %v767_v17, %v1535_v46 }
 0x32f   : > { %v798_v26 = vadd.f32 %v782_v25, %v758_v58  ;;  %v799_v29 = vadd.f32 %v783_v23, %v759_v22 }
 0x331   : > { %814 = vst [vmem:[%s1626_s30 + $0x70] sm:$0xff] %v798_v26 }
 0x332   : > { %815 = vst [vmem:[%s1626_s30 + $0x78] sm:$0xff] %v799_v29 }
 0x333   : > { %v737_v30 = vpop.permute.xlu1 %736 }
 0x334   : > { %v766_v40 = vsub.f32 1.0, %v737_v30  ;;  %v756_v41 = vmul.f32 %v737_v30, %v1514_v38  ;;  %v757_v45 = vmul.f32 %v737_v30, %v1517_v39 }
 0x336   : > { %v780_v46 = vmul.f32 %v766_v40, %v1508_v36  ;;  %v781_v47 = vmul.f32 %v766_v40, %v1511_v37 }
 0x338   : > { %v796_v35 = vadd.f32 %v780_v46, %v756_v41  ;;  %v797_v56 = vadd.f32 %v781_v47, %v757_v45 }
 0x33a   : > { %812 = vst [vmem:[%s1626_s30 + $0x60] sm:$0xff] %v796_v35 }
 0x33b   : > { %813 = vst [vmem:[%s1626_s30 + $0x68] sm:$0xff] %v797_v56 }
 0x33c   : > { %1163 = shalt.err (!%p1160_p11)
}
 0x33d   : > { %s1217_s29 = smov 256   ;;  %s1218_s14 = smov 16  }
 0x33e   : > { %973 = dma.vmem_to_hbm [thread:$0]  (%p1336_p7), %s830_s3, 2048, %s832_s23, %s817_s13, %s1217_s29, %s1217_s29, %s1218_s14  }
 0x33f PF: > { %s1739_s17 = sld [smem:[#allocation13_spill]]  ;;  %p1741_p12 = scmp.ge.s32.totalorder %s1210_s12, 2 }
 0x341   : > { %p987_p13 = pnand %p1741_p12, %p1304_p6 }
 0x343   : > { %p988_p0 = pneg %p987_p13 }
 0x345   : > { %s846_s25 = sand.u32 1, %s1739_s17  }
 0x346   : > { %s847_s30 = scalar_lea.sflag [#allocation4], %s846_s25 }
 0x347   : > { %1193 = dma.done.wait (%p988_p0), %s847_s30, 2048  }
 0x348   : > { %1195 = vsyncadd (%p988_p0), %s847_s30, 4294965248  ;;  %s1742_s12 = sld [smem:[#allocation16_spill]]  ;;  %s1745_s30 = smov %s1202_s10 }
 0x349   : > { %s1743_s18 = sld [smem:[#allocation14_spill]] }
 0x34a   : > { %s1744_s11 = sld [smem:[#allocation17_spill]] }
 0x34e   : > { %p25_p3 = scmp.ge.s32.totalorder %s1742_s12, 4  }
 0x34f   : > { %s1746_s10 = smov %s1743_s18 }
 0x350   :  { %27 = sbr.rel (!%p25_p3) target bundleno = 10 (0xa), region = 118 }
 0x355   :  { %853 = vsyncpa [#allocation3], 1 }
 0x356   :  { %855 = vsyncpa [#allocation3 + $0x1], 1 }
 0x357   :  { %856 = vsyncpa [#allocation6], 1 }
 0x358   :  { %858 = vsyncpa [#allocation6 + $0x1], 1 }
 0x359   :  { %859 = vsyncpa [#allocation4], 1 }
 0x35a   :  { %861 = vsyncpa [#allocation4 + $0x1], 1 }

</bundles_post_ra>
